<compile_context>
chip_gen: v6e
topology: v6e:2x2x1
jax: 0.10.0
libtpu: 0.0.40
codegen_flags: <defaults>
</compile_context>

<pallas_src>
import functools

import numpy as np

import jax
import jax.numpy as jnp
from jax import lax
from jax.experimental import pallas as pl
from jax.experimental.pallas import tpu as pltpu


def _contrastive_block_kernel(text_ref, img_ref, out_ref, *, margin, num_images,
                              emb_dim, block_b, batch_size):
    # text_ref: (TB, D)   img_ref: (TB, M*D) lane-dense   out_ref: (1, D)
    anchor = text_ref[...].astype(jnp.float32)                    # (TB, D)
    acc = jnp.zeros(anchor.shape, jnp.float32)                    # running hinge sum

    # Static unrolled loop over the M images of each anchor; the m-th image of
    # every anchor lives in lanes [m*D, (m+1)*D) of the image tile.
    for m in range(num_images):
        img_m = img_ref[:, pl.ds(m * emb_dim, emb_dim)].astype(jnp.float32)
        diff = anchor - img_m                                      # (TB, D)
        if m == 0:
            # positive pair, label = +1:  max(0, margin - diff)
            acc = acc + jnp.maximum(margin - diff, 0.0)
        else:
            # negative pair, label = -1:  max(0, margin + diff)
            acc = acc + jnp.maximum(margin + diff, 0.0)

    if batch_size % block_b != 0:
        # Remainder block: rows >= batch_size are padding (garbage / zeros) and
        # must not contribute (zero rows would otherwise add `margin` each).
        row = (pl.program_id(0) * block_b
               + lax.broadcasted_iota(jnp.int32, (block_b, 1), 0))
        acc = jnp.where(row < batch_size, acc, 0.0)

    # Per-block, per-lane partial sum; cross-block/lane reduction + 1/(D*P)
    # scaling happen once in the JAX wrapper.
    out_ref[...] = jnp.sum(acc, axis=0, keepdims=True)


def _pick_block_b(B, M, D, itemsize):
    """Rows of text per grid step.

    Conservative, generation-agnostic VMEM budget: double-buffered (text + image)
    input tiles plus the ~4 live (TB, D) f32 temporaries of the kernel body, kept
    under the smallest default scoped-VMEM limit (16 MiB on v5e).  If a caller
    hits the larger budget, the wrapper raises vmem_limit_bytes explicitly.
    """
    budget = 14 << 20
    bytes_per_row = 2 * (M + 1) * D * itemsize + 4 * (D * 4)
    tb = max(1, int(budget // bytes_per_row))
    if tb >= B:
        return B
    tb = max(8, (tb // 8) * 8)                 # keep the sublane dim 8-aligned
    # Prefer >= 4 grid steps so both v7x TensorCores get work and the input DMA
    # pipeline has something to overlap; never shrink tiles below 8 rows.
    while tb > 8 and (B + tb - 1) // tb < 4:
        tb = max(8, ((tb // 2) // 8) * 8)
    return min(tb, B)


def contrastive_loss(text_embeddings, image_embeddings, margin=1.0, block_b=None):
    B, D = text_embeddings.shape
    N, D2 = image_embeddings.shape
    assert D == D2, (D, D2)
    assert N % B == 0, (N, B)
    M = N // B
    P = N                                      # total number of pairs (= B * M)

    # Lane-dense 2-D view: (B, M*D).  Row-major order is unchanged, so (for D a
    # multiple of 128) this is a free bitcast — unlike a (B, M, D) view whose
    # M<8 second-minor dim forces sublane padding and an HBM relayout copy.
    imgs2d = image_embeddings.reshape(B, M * D)

    if block_b is None:
        block_b = _pick_block_b(B, M, D, text_embeddings.dtype.itemsize)
    block_b = max(1, min(int(block_b), B))
    nblocks = pl.cdiv(B, block_b)

    kernel = functools.partial(
        _contrastive_block_kernel,
        margin=float(margin), num_images=M, emb_dim=D,
        block_b=block_b, batch_size=B)

    # Double-buffered input tiles + f32 temporaries; only raise the scoped VMEM
    # limit when we actually need more than the smallest (v5e) default.
    est_vmem = (2 * block_b * (M + 1) * D * text_embeddings.dtype.itemsize
                + 6 * block_b * D * 4)
    cp_kwargs = dict(dimension_semantics=("parallel",))   # megacore-shardable axis
    if est_vmem > (12 << 20):
        cp_kwargs["vmem_limit_bytes"] = 32 << 20           # safe on v5e/v6e/v7x

    partials = pl.pallas_call(
        kernel,
        grid=(nblocks,),
        in_specs=[
            pl.BlockSpec((block_b, D), lambda i: (i, 0)),        # text tile
            pl.BlockSpec((block_b, M * D), lambda i: (i, 0)),    # image tile (2-D)
        ],
        out_specs=pl.BlockSpec((1, D), lambda i: (i, 0)),        # per-block partial
        out_shape=jax.ShapeDtypeStruct((nblocks, D), jnp.float32),
        compiler_params=pltpu.CompilerParams(**cp_kwargs),
    )(text_embeddings, imgs2d)

    # mean over D per pair, then mean over pairs  ==  total_sum / (D * P)
    return jnp.sum(partials) / jnp.float32(D * P)


def generate_subsamples(batch_size, num_images):
    """Mirrors ContrastiveLoss.generate_subsamples."""
    pairs = []
    for i in range(batch_size):
        pairs.append((i, i * num_images, 1))
        for j in range(num_images):
            if j != 0:
                pairs.append((i, i * num_images + j, -1))
    return pairs


def _reference_loss(text, img, pairs, margin):
    total = jnp.float32(0.0)
    for (ai, oi, lab) in pairs:
        total = total + jnp.mean(
            jnp.maximum(margin - lab * (text[ai] - img[oi]), 0.0))
    return total / len(pairs)


if __name__ == "__main__":
    margin = 1.0
    key = jax.random.PRNGKey(0)
    k1, k2, k3, k4, k5, k6 = jax.random.split(key, 6)

    # --- small test matching the module's natural shapes ---
    B, M, D = 2, 4, 32
    text_embeddings = jax.random.normal(k1, (B, D), dtype=jnp.float32)
    image_embeddings = jax.random.normal(k2, (B * M, D), dtype=jnp.float32)

    loss = jax.block_until_ready(
        contrastive_loss(text_embeddings, image_embeddings, margin=margin))
    ref = _reference_loss(text_embeddings, image_embeddings,
                          generate_subsamples(B, M), margin)
    assert np.allclose(np.asarray(loss), np.asarray(ref), rtol=1e-5, atol=1e-5), (
        float(loss), float(ref))

    # --- multi-block path (grid > 1, lane-aligned D) ---
    B2, M2, D2 = 8, 4, 128
    text2 = jax.random.normal(k3, (B2, D2), dtype=jnp.float32)
    imgs2 = jax.random.normal(k4, (B2 * M2, D2), dtype=jnp.float32)

    loss2 = jax.block_until_ready(
        contrastive_loss(text2, imgs2, margin=margin, block_b=2))
    ref2 = _reference_loss(text2, imgs2, generate_subsamples(B2, M2), margin)
    assert np.allclose(np.asarray(loss2), np.asarray(ref2), rtol=1e-5, atol=1e-5), (
        float(loss2), float(ref2))

    # --- remainder block (B not divisible by block_b) exercises the masked path ---
    B3, M3, D3 = 6, 4, 128
    text3 = jax.random.normal(k5, (B3, D3), dtype=jnp.float32)
    imgs3 = jax.random.normal(k6, (B3 * M3, D3), dtype=jnp.float32)

    loss3 = jax.block_until_ready(
        contrastive_loss(text3, imgs3, margin=margin, block_b=4))
    ref3 = _reference_loss(text3, imgs3, generate_subsamples(B3, M3), margin)
    assert np.allclose(np.asarray(loss3), np.asarray(ref3), rtol=1e-5, atol=1e-5), (
        float(loss3), float(ref3))

    print("KERNEL_OK")
</pallas_src>

<mosaic_0001>
module attributes {stable_mosaic.version = 11 : i64} {
  func.func @_contrastive_block_kernel(%arg0: i32, %arg1: memref<2x32xf32, #tpu.memory_space<vmem>>, %arg2: memref<2x128xf32, #tpu.memory_space<vmem>>, %arg3: memref<1x32xf32, #tpu.memory_space<vmem>>) attributes {dimension_semantics = [#tpu.dimension_semantics<parallel>], iteration_bounds = array<i64: 1>, scalar_prefetch = 0 : i64, scratch_operands = 0 : i64, tpu.core_type = #tpu.core_type<tc>, window_params = [{transform_indices = @transform_0, window_bounds = array<i64: 2, 32>}, {transform_indices = @transform_1, window_bounds = array<i64: 2, 128>}, {transform_indices = @transform_2, window_bounds = array<i64: 1, 32>}]} {
    %c0 = arith.constant 0 : index
    %c0_0 = arith.constant 0 : index
    %0 = vector.load %arg1[%c0, %c0_0] : memref<2x32xf32, #tpu.memory_space<vmem>>, vector<2x32xf32>
    %cst = arith.constant 0.000000e+00 : f32
    %1 = vector.broadcast %cst : f32 to vector<2x32xf32>
    %c0_1 = arith.constant 0 : index
    %c0_2 = arith.constant 0 : index
    %2 = vector.load %arg2[%c0_1, %c0_2] : memref<2x128xf32, #tpu.memory_space<vmem>>, vector<2x32xf32>
    %3 = arith.subf %0, %2 : vector<2x32xf32>
    %cst_3 = arith.constant 1.000000e+00 : f32
    %4 = vector.broadcast %cst_3 : f32 to vector<2x32xf32>
    %5 = arith.subf %4, %3 : vector<2x32xf32>
    %cst_4 = arith.constant 0.000000e+00 : f32
    %6 = vector.broadcast %cst_4 : f32 to vector<2x32xf32>
    %7 = arith.maximumf %5, %6 : vector<2x32xf32>
    %8 = arith.addf %1, %7 : vector<2x32xf32>
    %c0_5 = arith.constant 0 : index
    %c32 = arith.constant 32 : index
    %9 = vector.load %arg2[%c0_5, %c32] : memref<2x128xf32, #tpu.memory_space<vmem>>, vector<2x32xf32>
    %10 = arith.subf %0, %9 : vector<2x32xf32>
    %cst_6 = arith.constant 1.000000e+00 : f32
    %11 = vector.broadcast %cst_6 : f32 to vector<2x32xf32>
    %12 = arith.addf %11, %10 : vector<2x32xf32>
    %cst_7 = arith.constant 0.000000e+00 : f32
    %13 = vector.broadcast %cst_7 : f32 to vector<2x32xf32>
    %14 = arith.maximumf %12, %13 : vector<2x32xf32>
    %15 = arith.addf %8, %14 : vector<2x32xf32>
    %c0_8 = arith.constant 0 : index
    %c64 = arith.constant 64 : index
    %16 = vector.load %arg2[%c0_8, %c64] : memref<2x128xf32, #tpu.memory_space<vmem>>, vector<2x32xf32>
    %17 = arith.subf %0, %16 : vector<2x32xf32>
    %cst_9 = arith.constant 1.000000e+00 : f32
    %18 = vector.broadcast %cst_9 : f32 to vector<2x32xf32>
    %19 = arith.addf %18, %17 : vector<2x32xf32>
    %cst_10 = arith.constant 0.000000e+00 : f32
    %20 = vector.broadcast %cst_10 : f32 to vector<2x32xf32>
    %21 = arith.maximumf %19, %20 : vector<2x32xf32>
    %22 = arith.addf %15, %21 : vector<2x32xf32>
    %c0_11 = arith.constant 0 : index
    %c96 = arith.constant 96 : index
    %23 = vector.load %arg2[%c0_11, %c96] : memref<2x128xf32, #tpu.memory_space<vmem>>, vector<2x32xf32>
    %24 = arith.subf %0, %23 : vector<2x32xf32>
    %cst_12 = arith.constant 1.000000e+00 : f32
    %25 = vector.broadcast %cst_12 : f32 to vector<2x32xf32>
    %26 = arith.addf %25, %24 : vector<2x32xf32>
    %cst_13 = arith.constant 0.000000e+00 : f32
    %27 = vector.broadcast %cst_13 : f32 to vector<2x32xf32>
    %28 = arith.maximumf %26, %27 : vector<2x32xf32>
    %29 = arith.addf %22, %28 : vector<2x32xf32>
    %cst_14 = arith.constant dense<0.000000e+00> : vector<32xf32>
    %30 = vector.multi_reduction <add>, %29, %cst_14 [0] : vector<2x32xf32> to vector<32xf32>
    %31 = vector.shape_cast %30 : vector<32xf32> to vector<1x32xf32>
    %c0_15 = arith.constant 0 : index
    %c0_16 = arith.constant 0 : index
    %32 = vector.load %arg3[%c0_15, %c0_16] : memref<1x32xf32, #tpu.memory_space<vmem>>, vector<1x32xf32>
    tpu.vector_store %arg3[%c0_15, %c0_16], %31 {strides = array<i32>} : memref<1x32xf32, #tpu.memory_space<vmem>>, vector<1x32xf32>,
    return
  }
  func.func @transform_0(%arg0: i32) -> (i32, i32) {
    %c0_i32 = arith.constant 0 : i32
    %c0_i32_0 = arith.constant 0 : i32
    return %arg0, %c0_i32 : i32, i32
  }
  func.func @transform_1(%arg0: i32) -> (i32, i32) {
    %c0_i32 = arith.constant 0 : i32
    %c0_i32_0 = arith.constant 0 : i32
    return %arg0, %c0_i32 : i32, i32
  }
  func.func @transform_2(%arg0: i32) -> (i32, i32) {
    %c0_i32 = arith.constant 0 : i32
    %c0_i32_0 = arith.constant 0 : i32
    return %arg0, %c0_i32 : i32, i32
  }
}

</mosaic_0001>

<bundles_post_ra>
// kernel: tpu_custom_call.1
= control target key start
LH: loop header
LB: loop body
LE: loop exit
PB: predicated region body
PF: predicated region fallthrough
CT: control target
= control target key end

     0   :  { %7 = vsyncpa [#allocation3], 0  ;;  %s192_s0 = inlined_call_operand.hbm [shape: f32[2,32], index: 0, kind: input, shape index: {}]   ;;  %s193_s1 = inlined_call_operand.hbm [shape: f32[2,128], index: 1, kind: input, shape index: {}]   ;;  %s194_s2 = inlined_call_operand.hbm [shape: f32[1,32], index: 2, kind: output, shape index: {}]  }
   0x1   :  { %8 = vsyncpa [#allocation6], 0 }
   0x2   :  { %9 = vsyncpa [#allocation4], 0  ;;  %s162_s9 = smov [#allocation2]   ;;  %s163_s11 = smov [#allocation5]  }
   0x3   :  { %s16_s10 = sshll.u32 %s162_s9, 4  ;;  %s26_s12 = sshll.u32 %s163_s11, 4  ;;  %s17_s10 = int_to_ptr.vmem [resolvable:$true] %s16_s10  ;;  %s27_s12 = int_to_ptr.vmem [resolvable:$true] %s26_s12 }
   0x4   :  { %s104_s13 = scalar_lea.vmem %s17_s10, 32  ;;  %p109_p1 = scmp.lt.s32.totalorder %s17_s10, %s17_s10 }
   0x5   :  { %p105_p0 = scmp.ne.s32.totalorder %s17_s10, %s104_s13  ;;  %p110_p2 = scmp.lt.s32.totalorder %s104_s13, %s104_s13 }
   0x7   :  { %p111_p3 = por %p110_p2, %p109_p1 }
   0x9   :  { %p112_p4 = pnand %p111_p3, %p105_p0 }
   0xb   :  { %115 = shalt.err (!%p112_p4)
}
   0xc   :  { %19 = dma.hbm_to_vmem [thread:$0]  %s192_s0, 32, %s17_s10, [#allocation3]  }
   0xd   :  { %s124_s16 = scalar_lea.vmem %s27_s12, 32  ;;  %p129_p6 = scmp.lt.s32.totalorder %s27_s12, %s27_s12 }
   0xe   :  { %p125_p5 = scmp.ne.s32.totalorder %s27_s12, %s124_s16  ;;  %p130_p7 = scmp.lt.s32.totalorder %s124_s16, %s124_s16 }
  0x10   :  { %p131_p8 = por %p130_p7, %p129_p6 }
  0x12   :  { %p132_p9 = pnand %p131_p8, %p125_p5 }
  0x14   :  { %135 = shalt.err (!%p132_p9)
}
  0x15   :  { %29 = dma.hbm_to_vmem [thread:$0]  %s193_s1, 32, %s27_s12, [#allocation6]  }
  0x16   :  { %156 = dma.done.wait [#allocation3], 32  }
  0x17   :  { %157 = vsyncadd [#allocation3], 4294967264 }
  0x18   :  { %158 = dma.done.wait [#allocation6], 32  }
  0x19   :  { %159 = vsyncadd [#allocation6], 4294967264  ;;  %v37_v0 = vld [vmem:[#allocation5] sm:$0x3]  ;;  %s164_s19 = smov 96   ;;  %s165_s20 = smov 32  }
  0x1a   :  { %43 = vrot.lane.b32.xlu0 %v37_v0, %s164_s19  ;;  %57 = vrot.lane.b32.xlu1 %v37_v0, %s165_s20  ;;  %s166_s0 = smov 64   ;;  %v36_v1 = vld [vmem:[#allocation2] sm:$0x3]  ;;  %vm64_vm0 = vcmask 254976   ;;  %s167_s1 = smov [#allocation7]   ;;  %vm72_vm1 = vcmask 253952  }
  0x1b   :  { %v38_v2 = vsub.f32 %v36_v1, %v37_v0  ;;  %s80_s21 = sshll.u32 %s167_s1, 4  ;;  %s81_s21 = int_to_ptr.vmem [resolvable:$true] %s80_s21 }
  0x1c   :  { %s136_s22 = scalar_lea.vmem %s81_s21, 16  ;;  %s140_s23 = scalar_lea.vmem %s81_s21, 32 }
  0x1d   :  { %v39_v5 = vsub.f32 1.0, %v38_v2  ;;  %p137_p10 = scmp.ne.s32.totalorder %s81_s21, %s136_s22  ;;  %p141_p11 = scmp.lt.s32.totalorder %s81_s21, %s81_s21 }
  0x1e   :  { %50 = vrot.lane.b32.xlu0 %v37_v0, %s166_s0  ;;  %p142_p12 = scmp.lt.s32.totalorder %s140_s23, %s136_s22 }
  0x1f   :  { %v40_v10 = vmax.f32 %v39_v5, 0.0 }
  0x20   :  { %p143_p13 = por %p142_p12, %p141_p11 }
  0x22   :  { %p144_p0 = pnand %p143_p13, %p137_p10 }
  0x8c   :  { %v44_v3 = vpop.permute.xlu0 %43  ;;  %v58_v4 = vpop.permute.xlu1 %57 }
  0x8d   :  { %v46_v6 = vsub.f32 %v36_v1, %v44_v3  ;;  %v60_v7 = vsub.f32 %v36_v1, %v58_v4 }
  0x8f   :  { %v47_v8 = vadd.f32 1.0, %v46_v6  ;;  %v61_v13 = vadd.f32 1.0, %v60_v7 }
  0x90   :  { %v51_v9 = vpop.permute.xlu0 %50 }
  0x91   :  { %v48_v11 = vmax.f32 %v47_v8, 0.0  ;;  %v53_v12 = vsub.f32 %v36_v1, %v51_v9  ;;  %v62_v17 = vmax.f32 %v61_v13, 0.0 }
  0x93   :  { %v54_v14 = vadd.f32 1.0, %v53_v12  ;;  %v49_v15 = vadd.f32 %v48_v11, %v40_v10 }
  0x95   :  { %v55_v16 = vmax.f32 %v54_v14, 0.0 }
  0x97   :  { %v56_v18 = vadd.f32 %v55_v16, %v49_v15 }
  0x99   :  { %v63_v19 = vadd.f32 %v62_v17, %v56_v18 }
  0x9b   :  { %v65_v20 = vsel %vm64_vm0, %v63_v19, 0.0 }
  0x9c   :  { %v66_v21 = vrot.slane %v65_v20, 4 }
  0x9e   :  { %v67_v22 = vadd.f32 %v66_v21, %v65_v20 }
  0xa0   :  { %v68_v23 = vrot.slane %v67_v22, 2 }
  0xa2   :  { %v69_v24 = vadd.f32 %v68_v23, %v67_v22 }
  0xa4   :  { %v70_v25 = vrot.slane %v69_v24, 1 }
  0xa6   :  { %v71_v26 = vadd.f32 %v70_v25, %v69_v24 }
  0xa8   :  { %73 = vst.msk [vmem:[#allocation7] sm:$0x1] %vm72_vm1, %v71_v26 }
  0xa9   :  { %147 = shalt.err (!%p144_p0)
}
  0xaa   :  { %83 = dma.vmem_to_hbm [thread:$0]  %s81_s21, 16, %s194_s2, [#allocation4]  }
  0xab   :  { %160 = dma.done.wait [#allocation4], 16  }
  0xac   :  { %161 = vsyncadd [#allocation4], 4294967280 }
  0xad   :  { %87 = vsyncpa [#allocation3], 1 }
  0xae   :  { %88 = vsyncpa [#allocation6], 1 }
  0xaf   :  { %89 = vsyncpa [#allocation4], 1 }

</bundles_post_ra>
